<compile_context>
chip_gen: v7x
topology: tpu7x:2x2x1
jax: 0.10.0
libtpu: 0.0.40
codegen_flags: <defaults>
</compile_context>

<pallas_src>
import functools

import jax
import jax.numpy as jnp
from jax.experimental import pallas as pl
from jax.experimental.pallas import tpu as pltpu


# ------------------------- hardware / tiling helpers -------------------------

def _vmem_capacity_bytes():
    try:
        return int(pltpu.get_tpu_info().vmem_capacity_bytes)
    except Exception:
        return 64 * 1024 * 1024   # conservative fallback (v7x per-core VMEM)


def _num_tensorcores():
    """Best-effort TensorCores-per-chip; only v7x has 2.  Defaults to 1."""
    try:
        info = pltpu.get_tpu_info()
        for attr in ("num_cores", "num_tensorcores", "tensorcores_per_chip",
                     "cores_per_chip", "core_count"):
            val = getattr(info, attr, None)
            if val:
                return int(val)
    except Exception:
        pass
    try:
        kind = jax.devices()[0].device_kind.lower()
        if "v7" in kind:
            return 2
    except Exception:
        pass
    return 1


def _row_multiple(itemsize):
    # sublane packing: 8 for 4-byte, 16 for 2-byte, 32 for 1-byte dtypes
    return max(8, 32 // max(1, int(itemsize)))


def _choose_row_tile(n, v, itemsize):
    """Rows per logits block, sized against this chip's real VMEM capacity."""
    vmem = _vmem_capacity_bytes()
    cast_bytes = 4 if itemsize < 4 else 0      # f32 materialization of narrow logits
    # per-row VMEM footprint: double-buffered logits + f32 cast temp
    # + lane-padded labels (x2 buffers) + lane-padded f32 accumulator
    row_bytes = 2 * v * itemsize + v * cast_bytes + 3 * 128 * 4
    budget = min(int(vmem * 0.45), 24 << 20)
    mult = _row_multiple(itemsize)
    tn = (budget // max(1, row_bytes)) // mult * mult
    tn = max(mult, min(int(tn), 2048))
    n_up = -(-n // mult) * mult
    return min(tn, max(mult, n_up))


def _ce_vmem_limit(tn, v, itemsize):
    vmem = _vmem_capacity_bytes()
    cast_bytes = 4 if itemsize < 4 else 0
    need = (2 * tn * v * itemsize          # double-buffered logits blocks
            + tn * v * cast_bytes          # f32 cast temp for narrow dtypes
            + 2 * tn * 128 * 4             # double-buffered lane-padded labels
            + tn * 128 * 4                 # (TN,1) f32 accumulator (lane-padded)
            + (8 << 20))                   # outputs + compiler slack
    return int(min(max(need, 32 << 20), int(vmem * 0.9)))


# ------------------------- cross entropy (sum) kernel -------------------------

def _ce_sum_kernel(logits_ref, labels_ref, out_ref, acc_ref, *,
                   n_rows, row_block, inner_steps):
    c = pl.program_id(0)     # chunk axis ("parallel"; only > 1 on v7x)
    i = pl.program_id(1)     # "arbitrary" reduction axis over row tiles

    @pl.when(i == 0)
    def _():
        acc_ref[...] = jnp.zeros_like(acc_ref)

    logits = logits_ref[...].astype(jnp.float32)           # (TN, V)
    labels = labels_ref[...]                               # (TN, 1) int32
    tn, v = logits.shape

    # Row validity: rows >= n_rows are ragged-tile / clamped-duplicate padding;
    # labels == -100 mirror F.cross_entropy's default ignore_index.  NaN/Inf in
    # invalid rows never propagates: the accumulation mask below is a lane
    # select, so no full-width sanitize of the streamed logits is needed.
    block = c * inner_steps + i
    row_ids = block * row_block + jax.lax.broadcasted_iota(jnp.int32, (tn, 1), 0)
    valid = jnp.logical_and(row_ids < n_rows, labels != -100)   # (TN, 1)

    # gather mask from a (1, V) lane iota broadcast against (TN, 1) labels
    lane_ids = jax.lax.broadcasted_iota(jnp.int32, (1, v), 1)
    eq = lane_ids == labels                                 # (TN, V)

    row_max = jnp.max(logits, axis=-1, keepdims=True)
    picked = jnp.max(jnp.where(eq, logits, -jnp.inf), axis=-1, keepdims=True)
    lse = row_max + jnp.log(
        jnp.sum(jnp.exp(logits - row_max), axis=-1, keepdims=True))
    ce = lse - picked                                       # (TN, 1)

    acc_ref[...] += jnp.where(valid, ce, 0.0)

    @pl.when(i == inner_steps - 1)
    def _():
        total = jnp.sum(acc_ref[...])
        lane = jax.lax.broadcasted_iota(jnp.int32, (1, 128), 1)
        out_ref[...] = jnp.where(lane == 0, total, 0.0)


def cross_entropy_mean(logits_2d, labels_1d, *, row_block=None, force_chunks=None):
    """Mean CE over non-ignored rows, reduction done inside Pallas.

    Matches F.cross_entropy(reduction='mean', ignore_index=-100): rows with
    label -100 are excluded from both the sum and the divisor.  Like the
    PyTorch module, a logits/labels length mismatch fails at trace time.
    """
    n, v = logits_2d.shape
    labels_2d = labels_1d.astype(jnp.int32).reshape(n, 1)

    itemsize = jnp.dtype(logits_2d.dtype).itemsize
    tn = row_block if row_block is not None else _choose_row_tile(n, v, itemsize)
    total_blocks = -(-n // tn)

    # The 2-way "parallel" chunk split only pays on v7x (2 TensorCores); on
    # v5e/v6e it is a serial reorder plus wasted DMA, so keep nc=1 there.  On
    # v7x avoid the clamped duplicate tail tile unless it is a small fraction.
    if force_chunks is not None:
        nc = max(1, min(int(force_chunks), total_blocks))
    elif (_num_tensorcores() >= 2 and total_blocks >= 2
          and (total_blocks % 2 == 0 or total_blocks >= 8)):
        nc = 2
    else:
        nc = 1
    inner_steps = -(-total_blocks // nc)

    if nc * inner_steps == total_blocks:
        def row_map(c, i):
            return (c * inner_steps + i, 0)
    else:
        def row_map(c, i):
            # Clamp the (rare) duplicated tail tile so its DMA stays in bounds;
            # its rows are masked inside the kernel.
            return (jnp.minimum(c * inner_steps + i, total_blocks - 1), 0)

    kernel = functools.partial(_ce_sum_kernel, n_rows=n, row_block=tn,
                               inner_steps=inner_steps)

    partials = pl.pallas_call(
        kernel,
        out_shape=jax.ShapeDtypeStruct((1, nc * 128), jnp.float32),
        grid=(nc, inner_steps),
        in_specs=[
            pl.BlockSpec((tn, v), row_map),
            pl.BlockSpec((tn, 1), row_map),
        ],
        out_specs=pl.BlockSpec((1, 128), lambda c, i: (0, c)),
        scratch_shapes=[pltpu.VMEM((tn, 1), jnp.float32)],
        compiler_params=pltpu.CompilerParams(
            dimension_semantics=("parallel", "arbitrary"),
            vmem_limit_bytes=_ce_vmem_limit(tn, v, itemsize)),
    )(logits_2d, labels_2d)
    # TODO(synk): for very large V (>= ~64k f32) add a vocab-tiled online
    # log-sum-exp (third "arbitrary" grid axis + running max/sum scratch) so TN
    # stays large against v7x's 64 MiB VMEM.
    denom = jnp.sum((labels_1d != -100).astype(jnp.float32))
    return jnp.sum(partials) / denom


# ------------------------- sequence-mean pooling -------------------------

def _seq_mean_kernel(x_ref, o_ref, *, t_total, t_tile, ragged):
    ti = pl.program_id(2)    # "arbitrary" reduction axis over sequence tiles

    @pl.when(ti == 0)
    def _():
        o_ref[...] = jnp.zeros_like(o_ref)

    x = x_ref[...].astype(jnp.float32)                       # (1, TT, TV)
    if ragged:
        seq_ids = t_tile * ti + jax.lax.broadcasted_iota(
            jnp.int32, (1, t_tile, 1), 1)
        x = jnp.where(seq_ids < t_total, x, 0.0)
    o_ref[...] += jnp.sum(x, axis=1, keepdims=True)

    @pl.when(ti == pl.num_programs(2) - 1)
    def _():
        o_ref[...] = o_ref[...] * jnp.float32(1.0 / t_total)


def seq_mean(logits_3d):
    """Mean over the sequence axis: (B, T, V) -> (B, V) in f32."""
    b, t, v = logits_3d.shape
    itemsize = jnp.dtype(logits_3d.dtype).itemsize
    vmem = _vmem_capacity_bytes()

    tv = v if v <= 4096 else 2048                  # lane tile: full dim or x128
    cast_bytes = 4 if itemsize < 4 else 0
    per_row = tv * (2 * itemsize + cast_bytes)     # double-buffered + f32 temp
    budget = min(int(vmem * 0.25), 8 << 20)
    tt = max(8, (budget // max(1, per_row)) // 8 * 8)
    if tt >= t:
        tt, ragged = t, False                      # full T in one block
    else:
        ragged = (t % tt) != 0
    nt = -(-t // tt)

    need = (2 * tt * tv * itemsize + tt * tv * cast_bytes
            + 2 * max(tv, 128) * 4 + (8 << 20))
    vmem_limit = int(min(max(need, 32 << 20), int(vmem * 0.9)))

    kernel = functools.partial(_seq_mean_kernel, t_total=t, t_tile=tt,
                               ragged=ragged)
    out = pl.pallas_call(
        kernel,
        out_shape=jax.ShapeDtypeStruct((b, 1, v), jnp.float32),
        grid=(b, -(-v // tv), nt),
        in_specs=[pl.BlockSpec((1, tt, tv), lambda bi, vi, ti: (bi, ti, vi))],
        out_specs=pl.BlockSpec((1, 1, tv), lambda bi, vi, ti: (bi, 0, vi)),
        compiler_params=pltpu.CompilerParams(
            dimension_semantics=("parallel", "parallel", "arbitrary"),
            vmem_limit_bytes=vmem_limit),
    )(logits_3d)
    # TODO(synk): could fuse this T-mean directly into the CE kernel to avoid
    # the (B, V) round-trip through HBM on the classification path.
    return out.reshape(b, v)


# ------------------------- module -------------------------

class MultiTaskLoss:
    """JAX/Pallas port of the PyTorch MultiTaskLoss module (no learned params)."""

    def __init__(self, task_weights=None):
        self.task_weights = task_weights or {
            'language_modeling': 1.0, 'classification': 1.0, 'generation': 1.0}

    def __call__(self, outputs, targets, task_type):
        logits = outputs['logits']
        labels = targets['labels']
        if task_type == 'language_modeling':
            if logits.shape[1] > labels.shape[1]:
                logits = logits[:, :labels.shape[1], :]
            elif labels.shape[1] > logits.shape[1]:
                labels = labels[:, :logits.shape[1]]
            loss = cross_entropy_mean(
                logits.reshape(-1, logits.shape[-1]), labels.reshape(-1))
        elif task_type == 'classification':
            if logits.ndim == 3:
                logits = seq_mean(logits)
            loss = cross_entropy_mean(logits, labels)
        elif task_type == 'generation':
            # NOTE: mirrors PyTorch — only logits are truncated here; if labels
            # are longer than logits this errors, as F.cross_entropy would.
            if logits.shape[1] > labels.shape[1]:
                logits = logits[:, :labels.shape[1], :]
            loss = cross_entropy_mean(
                logits.reshape(-1, logits.shape[-1]), labels.reshape(-1))
        else:
            raise ValueError(f'Unknown task type: {task_type}')
        return loss * jnp.float32(self.task_weights.get(task_type, 1.0))


# ------------------------- self-test -------------------------

def _ref_ce(logits_2d, labels_1d):
    """Pure-jnp reference (ignore_index=-100, mean over non-ignored rows)."""
    valid = labels_1d != -100
    safe = jnp.where(valid, labels_1d, 0)
    logp = jax.nn.log_softmax(logits_2d.astype(jnp.float32), axis=-1)
    nll = -logp[jnp.arange(logits_2d.shape[0]), safe]
    return jnp.sum(jnp.where(valid, nll, 0.0)) / jnp.sum(valid.astype(jnp.float32))


if __name__ == "__main__":
    key = jax.random.PRNGKey(0)
    B, T, V = 2, 8, 128
    keys = jax.random.split(key, 8)

    # language modeling / generation: logits longer than labels (truncation path)
    lm_logits = jax.random.normal(keys[0], (B, T + 2, V), dtype=jnp.float32)
    lm_labels = jax.random.randint(keys[1], (B, T), 0, V, dtype=jnp.int32)

    # classification: 3-D logits get mean-pooled over the sequence axis
    cls_logits = jax.random.normal(keys[2], (B, T, V), dtype=jnp.float32)
    cls_labels = jax.random.randint(keys[3], (B,), 0, V, dtype=jnp.int32)

    loss_fn = MultiTaskLoss({'language_modeling': 1.0,
                             'classification': 2.0,
                             'generation': 0.5})

    lm_loss = loss_fn({'logits': lm_logits}, {'labels': lm_labels},
                      'language_modeling')
    cls_loss = loss_fn({'logits': cls_logits}, {'labels': cls_labels},
                       'classification')
    gen_loss = loss_fn({'logits': lm_logits}, {'labels': lm_labels},
                       'generation')
    jax.block_until_ready((lm_loss, cls_loss, gen_loss))

    ref_lm = _ref_ce(lm_logits[:, :T, :].reshape(-1, V),
                     lm_labels.reshape(-1)) * 1.0
    ref_cls = _ref_ce(cls_logits.mean(axis=1), cls_labels) * 2.0
    ref_gen = _ref_ce(lm_logits[:, :T, :].reshape(-1, V),
                      lm_labels.reshape(-1)) * 0.5
    assert jnp.allclose(lm_loss, ref_lm, atol=1e-4, rtol=1e-4)
    assert jnp.allclose(cls_loss, ref_cls, atol=1e-4, rtol=1e-4)
    assert jnp.allclose(gen_loss, ref_gen, atol=1e-4, rtol=1e-4)

    # ignore_index=-100: ignored rows drop out of sum and divisor
    lm_labels_ign = lm_labels.at[0, :2].set(-100)
    ign_loss = loss_fn({'logits': lm_logits}, {'labels': lm_labels_ign},
                       'language_modeling')
    ref_ign = _ref_ce(lm_logits[:, :T, :].reshape(-1, V),
                      lm_labels_ign.reshape(-1))
    jax.block_until_ready(ign_loss)
    assert jnp.allclose(ign_loss, ref_ign, atol=1e-4, rtol=1e-4)

    # multi-block grids with ragged (N % 8 != 0) tails:
    #   auto chunking (nc=1 on v5e/v6e), forced 2-chunk balanced split,
    #   and forced 2-chunk with an odd block count (clamped duplicate + mask).
    big_logits = jax.random.normal(keys[4], (44, V), dtype=jnp.float32)
    big_labels = jax.random.randint(keys[5], (44,), 0, V, dtype=jnp.int32)
    ref_big = _ref_ce(big_logits, big_labels)
    got_auto = cross_entropy_mean(big_logits, big_labels, row_block=8)
    got_two = cross_entropy_mean(big_logits, big_labels, row_block=8,
                                 force_chunks=2)
    got_odd = cross_entropy_mean(big_logits[:40], big_labels[:40], row_block=8,
                                 force_chunks=2)
    jax.block_until_ready((got_auto, got_two, got_odd))
    assert jnp.allclose(got_auto, ref_big, atol=1e-4, rtol=1e-4)
    assert jnp.allclose(got_two, ref_big, atol=1e-4, rtol=1e-4)
    assert jnp.allclose(got_odd, _ref_ce(big_logits[:40], big_labels[:40]),
                        atol=1e-4, rtol=1e-4)

    # bf16 logits: native-dtype HBM streaming, f32 cast in vregs
    bf_logits = big_logits.astype(jnp.bfloat16)
    got_bf = cross_entropy_mean(bf_logits, big_labels)
    jax.block_until_ready(got_bf)
    assert jnp.allclose(got_bf, _ref_ce(bf_logits, big_labels),
                        atol=2e-2, rtol=2e-2)

    print("KERNEL_OK")
</pallas_src>

<mosaic_0001>
module attributes {stable_mosaic.version = 11 : i64} {
  func.func @_ce_sum_kernel(%arg0: i32, %arg1: i32, %arg2: memref<16x128xf32, #tpu.memory_space<vmem>>, %arg3: memref<16x1xi32, #tpu.memory_space<vmem>>, %arg4: memref<1x128xf32, #tpu.memory_space<vmem>>, %arg5: memref<16x1xf32, #tpu.memory_space<vmem>>) attributes {dimension_semantics = [#tpu.dimension_semantics<parallel>, #tpu.dimension_semantics<arbitrary>], iteration_bounds = array<i64: 1, 1>, scalar_prefetch = 0 : i64, scratch_operands = 1 : i64, tpu.core_type = #tpu.core_type<tc>, window_params = [{transform_indices = @transform_0, window_bounds = array<i64: 16, 128>}, {transform_indices = @transform_1, window_bounds = array<i64: 16, 1>}, {transform_indices = @transform_2, window_bounds = array<i64: 1, 128>}]} {
    %c0_i32 = arith.constant 0 : i32
    %0 = arith.cmpi eq, %arg1, %c0_i32 : i32
    %1 = arith.extui %0 : i1 to i32
    %c0_i32_0 = arith.constant 0 : i32
    %2 = arith.cmpi ne, %1, %c0_i32_0 : i32
    scf.if %2 {
      %cst_15 = arith.constant 0.000000e+00 : f32
      %42 = vector.broadcast %cst_15 : f32 to vector<16x1xf32>
      %c0_16 = arith.constant 0 : index
      %c0_17 = arith.constant 0 : index
      %43 = vector.load %arg5[%c0_16, %c0_17] : memref<16x1xf32, #tpu.memory_space<vmem>>, vector<16x1xf32>
      tpu.vector_store %arg5[%c0_16, %c0_17], %42 {strides = array<i32>} : memref<16x1xf32, #tpu.memory_space<vmem>>, vector<16x1xf32>,
    } else {
    }
    %c0 = arith.constant 0 : index
    %c0_1 = arith.constant 0 : index
    %3 = vector.load %arg2[%c0, %c0_1] : memref<16x128xf32, #tpu.memory_space<vmem>>, vector<16x128xf32>
    %c0_2 = arith.constant 0 : index
    %c0_3 = arith.constant 0 : index
    %4 = vector.load %arg3[%c0_2, %c0_3] : memref<16x1xi32, #tpu.memory_space<vmem>>, vector<16x1xi32>
    %c1_i32 = arith.constant 1 : i32
    %5 = arith.muli %arg0, %c1_i32 : i32
    %6 = arith.addi %5, %arg1 : i32
    %c16_i32 = arith.constant 16 : i32
    %7 = arith.muli %6, %c16_i32 : i32
    %8 = tpu.iota {dimensions = array<i32: 0>} : vector<16x1xi32>
    %9 = vector.broadcast %7 : i32 to vector<16x1xi32>
    %10 = arith.addi %9, %8 : vector<16x1xi32>
    %c16_i32_4 = arith.constant 16 : i32
    %11 = vector.broadcast %c16_i32_4 : i32 to vector<16x1xi32>
    %12 = arith.cmpi slt, %10, %11 : vector<16x1xi32>
    %c-100_i32 = arith.constant -100 : i32
    %13 = vector.broadcast %c-100_i32 : i32 to vector<16x1xi32>
    %14 = arith.cmpi ne, %4, %13 : vector<16x1xi32>
    %15 = arith.andi %12, %14 : vector<16x1xi1>
    %16 = tpu.iota {dimensions = array<i32: 1>} : vector<1x128xi32>
    %17 = vector.broadcast %16 : vector<1x128xi32> to vector<16x128xi32>
    %18 = vector.broadcast %4 : vector<16x1xi32> to vector<16x128xi32>
    %19 = arith.cmpi eq, %17, %18 : vector<16x128xi32>
    %cst = arith.constant dense<0xFF800000> : vector<16xf32>
    %20 = vector.multi_reduction <maximumf>, %3, %cst [1] : vector<16x128xf32> to vector<16xf32>
    %21 = vector.shape_cast %20 : vector<16xf32> to vector<16x1xf32>
    %cst_5 = arith.constant 0xFF800000 : f32
    %22 = vector.broadcast %cst_5 : f32 to vector<16x128xf32>
    %23 = arith.select %19, %3, %22 : vector<16x128xi1>, vector<16x128xf32>
    %cst_6 = arith.constant dense<0xFF800000> : vector<16xf32>
    %24 = vector.multi_reduction <maximumf>, %23, %cst_6 [1] : vector<16x128xf32> to vector<16xf32>
    %25 = vector.shape_cast %24 : vector<16xf32> to vector<16x1xf32>
    %26 = vector.broadcast %21 : vector<16x1xf32> to vector<16x128xf32>
    %27 = arith.subf %3, %26 : vector<16x128xf32>
    %28 = math.exp %27 : vector<16x128xf32>
    %cst_7 = arith.constant dense<0.000000e+00> : vector<16xf32>
    %29 = vector.multi_reduction <add>, %28, %cst_7 [1] : vector<16x128xf32> to vector<16xf32>
    %30 = vector.shape_cast %29 : vector<16xf32> to vector<16x1xf32>
    %31 = math.log %30 : vector<16x1xf32>
    %32 = arith.addf %21, %31 : vector<16x1xf32>
    %33 = arith.subf %32, %25 : vector<16x1xf32>
    %c0_8 = arith.constant 0 : index
    %c0_9 = arith.constant 0 : index
    %34 = vector.load %arg5[%c0_8, %c0_9] : memref<16x1xf32, #tpu.memory_space<vmem>>, vector<16x1xf32>
    %cst_10 = arith.constant 0.000000e+00 : f32
    %35 = vector.broadcast %cst_10 : f32 to vector<16x1xf32>
    %36 = arith.select %15, %33, %35 : vector<16x1xi1>, vector<16x1xf32>
    %37 = arith.addf %34, %36 : vector<16x1xf32>
    %c0_11 = arith.constant 0 : index
    %c0_12 = arith.constant 0 : index
    %38 = vector.load %arg5[%c0_11, %c0_12] : memref<16x1xf32, #tpu.memory_space<vmem>>, vector<16x1xf32>
    tpu.vector_store %arg5[%c0_11, %c0_12], %37 {strides = array<i32>} : memref<16x1xf32, #tpu.memory_space<vmem>>, vector<16x1xf32>,
    %c0_i32_13 = arith.constant 0 : i32
    %39 = arith.cmpi eq, %arg1, %c0_i32_13 : i32
    %40 = arith.extui %39 : i1 to i32
    %c0_i32_14 = arith.constant 0 : i32
    %41 = arith.cmpi ne, %40, %c0_i32_14 : i32
    scf.if %41 {
      %c0_15 = arith.constant 0 : index
      %c0_16 = arith.constant 0 : index
      %42 = vector.load %arg5[%c0_15, %c0_16] : memref<16x1xf32, #tpu.memory_space<vmem>>, vector<16x1xf32>
      %43 = vector.shape_cast %42 : vector<16x1xf32> to vector<1x16x1xf32>
      %cst_17 = arith.constant dense<0.000000e+00> : vector<1xf32>
      %44 = vector.multi_reduction <add>, %43, %cst_17 [1, 2] : vector<1x16x1xf32> to vector<1xf32>
      %45 = vector.shape_cast %44 : vector<1xf32> to vector<1x1x1xf32>
      %46 = vector.extract %45[0, 0, 0] : f32 from vector<1x1x1xf32>
      %47 = tpu.iota {dimensions = array<i32: 1>} : vector<1x128xi32>
      %c0_i32_18 = arith.constant 0 : i32
      %48 = vector.broadcast %c0_i32_18 : i32 to vector<1x128xi32>
      %49 = arith.cmpi eq, %47, %48 : vector<1x128xi32>
      %cst_19 = arith.constant 0.000000e+00 : f32
      %50 = vector.broadcast %46 : f32 to vector<1x128xf32>
      %51 = vector.broadcast %cst_19 : f32 to vector<1x128xf32>
      %52 = arith.select %49, %50, %51 : vector<1x128xi1>, vector<1x128xf32>
      %c0_20 = arith.constant 0 : index
      %c0_21 = arith.constant 0 : index
      %53 = vector.load %arg4[%c0_20, %c0_21] : memref<1x128xf32, #tpu.memory_space<vmem>>, vector<1x128xf32>
      tpu.vector_store %arg4[%c0_20, %c0_21], %52 {strides = array<i32>} : memref<1x128xf32, #tpu.memory_space<vmem>>, vector<1x128xf32>,
    } else {
    }
    return
  }
  func.func @transform_0(%arg0: i32, %arg1: i32) -> (i32, i32) {
    %c1_i32 = arith.constant 1 : i32
    %0 = arith.muli %arg0, %c1_i32 : i32
    %1 = arith.addi %0, %arg1 : i32
    %c0_i32 = arith.constant 0 : i32
    %c0_i32_0 = arith.constant 0 : i32
    return %1, %c0_i32 : i32, i32
  }
  func.func @transform_1(%arg0: i32, %arg1: i32) -> (i32, i32) {
    %c1_i32 = arith.constant 1 : i32
    %0 = arith.muli %arg0, %c1_i32 : i32
    %1 = arith.addi %0, %arg1 : i32
    %c0_i32 = arith.constant 0 : i32
    %c0_i32_0 = arith.constant 0 : i32
    return %1, %c0_i32 : i32, i32
  }
  func.func @transform_2(%arg0: i32, %arg1: i32) -> (i32, i32) {
    %c0_i32 = arith.constant 0 : i32
    %c0_i32_0 = arith.constant 0 : i32
    return %c0_i32, %arg0 : i32, i32
  }
}

</mosaic_0001>

<bundles_post_ra>
// kernel: tpu_custom_call.1
= control target key start
LH: loop header
LB: loop body
LE: loop exit
PB: predicated region body
PF: predicated region fallthrough
CT: control target
= control target key end

     0   :  { %v214_v2 = vmov 0   ;;  %s262_s0 = inlined_call_operand.vmem [shape: f32[16,128], index: 0, kind: input, shape index: {}]   ;;  %s263_s1 = inlined_call_operand.vmem [shape: s32[16,1], index: 1, kind: input, shape index: {}]   ;;  %s264_s2 = inlined_call_operand.hbm [shape: f32[1,128], index: 2, kind: output, shape index: {}]  }
   0x1   :  { %v63_v0 = vld [vmem:[%s262_s0] sm:$0xff]  ;;  %180 = vset.pattern.permute.xlu1 %v214_v2 }
   0x2   :  { %v65_v1 = vld [vmem:[%s263_s1] sm:$0xff]  ;;  %91 = vmax.xlane.f32.xlu0 %v63_v0 }
   0x3   :  { %7 = vsyncpa [#allocation4], 0  ;;  %v64_v3 = vld [vmem:[%s262_s0 + $0x8] sm:$0xff]  ;;  %84 = vperm.xlu1 %180, %v65_v1   ;;  %181 = vset.pattern.permute.xlu0 %v214_v2  ;;  %v81_v10 = vlaneseq  ;;  %vm60_vm2 = vcmask 7168   ;;  %v215_v19 = vmov 0.0   ;;  %vm77_vm3 = vcmp.ne.s32.totalorder %v65_v1, 4294967196 }
   0x4   :  { %v66_v4 = vld [vmem:[%s263_s1 + $0x8] sm:$0xff]  ;;  %61 = vst.msk [vmem:[#allocation2] sm:$0xff] %vm60_vm2, %v215_v19  ;;  %62 = vst.msk [vmem:[#allocation2 + $0x8] sm:$0xff] %vm60_vm2, %v215_v19  ;;  %s216_s0 = smov [#allocation3]  }
   0x5   :  { %v82_v13 = vand.u32 127, %v81_v10  ;;  %vm78_vm4 = vcmp.ne.s32.totalorder %v66_v4, 4294967196  ;;  %s155_s1 = sshll.u32 %s216_s0, 4  ;;  %s156_s1 = int_to_ptr.vmem [resolvable:$true] %s155_s1 }
   0x6   :  { %93 = vmax.xlane.f32.xlu0 %v64_v3  ;;  %s190_s18 = scalar_lea.vmem %s156_s1, 16  ;;  %s194_s19 = scalar_lea.vmem %s156_s1, 32 }
   0x7   :  { %87 = vperm.xlu1 %180, %v66_v4   ;;  %vm145_vm5 = vcmp.eq.s32.totalorder %v82_v13, 0  ;;  %p191_p0 = scmp.ne.s32.totalorder %s156_s1, %s190_s18  ;;  %p195_p1 = scmp.lt.s32.totalorder %s156_s1, %s156_s1 }
   0x8   :  { %p196_p2 = scmp.lt.s32.totalorder %s194_s19, %s190_s18 }
   0xa   :  { %p197_p3 = por %p196_p2, %p195_p1 }
   0xb   :  { %v119_v29 = vld [vmem:[#allocation2] sm:$0xff]  ;;  %v120_v35 = vld [vmem:[#allocation2 + $0x8] sm:$0xff] }
   0xc   :  { %p198_p4 = pnand %p197_p3, %p191_p0 }
  0x82   :  { %v85_v12 = vpop.permute.xlu1 %84 }
  0x83   :  { %vm89_vm0 = vcmp.eq.s32.totalorder %v82_v13, %v85_v12 }
  0x84   :  { %v95_v16 = vsel %vm89_vm0, %v63_v0, -inf }
  0x86   :  { %v88_v15 = vpop.permute.xlu1 %87 }
  0x87   :  { %vm90_vm1 = vcmp.eq.s32.totalorder %v82_v13, %v88_v15 }
  0x88   :  { %v96_v18 = vsel %vm90_vm1, %v64_v3, -inf }
  0x8f   :  { %v92_v5 = vpop.xlane.xlu0 %91 }
  0x90   :  { %v101_v6 = vsub.f32 %v63_v0, %v92_v5 }
  0x92   :  { %v103_v7 = vmul.f32 1.442695, %v101_v6 }
  0x93   :  { %v94_v8 = vpop.xlane.xlu0 %93 }
  0x94   :  { %182 = vpow2.f32 %v103_v7  ;;  %v102_v9 = vsub.f32 %v64_v3, %v94_v8 }
  0x96   :  { %v105_v11 = vmul.f32 1.442695, %v102_v9 }
  0x98   :  { %184 = vpow2.f32 %v105_v11 }
  0x9e   :  { %v183_v14 = vpop.eup %182 }
  0x9f   :  { %107 = vadd.xlane.f32.xlu0 %v183_v14 }
  0xa2   :  { %v185_v17 = vpop.eup %184 }
  0xa3   :  { %109 = vadd.xlane.f32.xlu1 %v185_v17  ;;  %97 = vmax.xlane.f32.xlu0 %v95_v16 }
  0xa7   :  { %99 = vmax.xlane.f32.xlu0 %v96_v18 }
 0x12c   :  { %v108_v20 = vpop.xlane.xlu0 %107 }
 0x12d   :  { %186 = vlog2.f32 %v108_v20 }
 0x130   :  { %v110_v21 = vpop.xlane.xlu1 %109  ;;  %v98_v24 = vpop.xlane.xlu0 %97 }
 0x131   :  { %188 = vlog2.f32 %v110_v21 }
 0x134   :  { %v100_v33 = vpop.xlane.xlu0 %99 }
 0x137   :  { %v187_v22 = vpop.eup %186 }
 0x138   :  { %v112_v23 = vmul.f32 0.6931472, %v187_v22 }
 0x13a   :  { %v115_v25 = vadd.f32 %v112_v23, %v92_v5 }
 0x13b   :  { %v189_v26 = vpop.eup %188 }
 0x13c   :  { %v114_v27 = vmul.f32 0.6931472, %v189_v26  ;;  %v117_v28 = vsub.f32 %v115_v25, %v98_v24 }
 0x13e   :  { %v121_v30 = vsel %vm77_vm3, %v117_v28, 0.0  ;;  %v116_v31 = vadd.f32 %v114_v27, %v94_v8 }
 0x13f   :  { %v123_v32 = vadd.f32 %v121_v30, %v119_v29 }
 0x140   :  { %v118_v34 = vsub.f32 %v116_v31, %v100_v33 }
 0x141   :  { %126 = vst.msk [vmem:[#allocation2] sm:$0xff] %vm60_vm2, %v123_v32 }
 0x142   :  { %v122_v36 = vsel %vm78_vm4, %v118_v34, 0.0 }
 0x143   :  { %v124_v37 = vadd.f32 %v122_v36, %v120_v35 }
 0x145   :  { %127 = vst.msk [vmem:[#allocation2 + $0x8] sm:$0xff] %vm60_vm2, %v124_v37 }
 0x148   :  { %v131_v38 = vld [vmem:[#allocation2] sm:$0xff] }
 0x149   :  { %v133_v40 = vsel %vm60_vm2, %v131_v38, 0.0 }
 0x14c   :  { %v132_v39 = vld [vmem:[#allocation2 + $0x8] sm:$0xff] }
 0x14d   :  { %v134_v41 = vsel %vm60_vm2, %v132_v39, 0.0 }
 0x14e   :  { %v135_v42 = vadd.f32 %v134_v41, %v133_v40 }
 0x150   :  { %136 = vadd.xlane.f32.xlu0 %v135_v42 }
 0x1dd   :  { %v137_v43 = vpop.xlane.xlu0 %136 }
 0x1de   :  { %v138_v44 = vrot.slane %v137_v43, 4 }
 0x1e0   :  { %v139_v45 = vadd.f32 %v138_v44, %v137_v43 }
 0x1e2   :  { %v140_v46 = vrot.slane %v139_v45, 2 }
 0x1e4   :  { %v141_v47 = vadd.f32 %v140_v46, %v139_v45 }
 0x1e6   :  { %v142_v48 = vrot.slane %v141_v47, 1 }
 0x1e8   :  { %v143_v49 = vadd.f32 %v142_v48, %v141_v47 }
 0x1ea   :  { %175 = vpush %v143_v49 }
 0x21b   :  { %s176_s17 = spop %175 }
 0x21c   :  { %v146_v50 = vstv %s176_s17 }
 0x21d   :  { %v147_v51 = vsel %vm145_vm5, %v146_v50, 0.0 }
 0x21e   :  { %148 = vst [vmem:[#allocation3] sm:$0x1] %v147_v51 }
 0x21f   :  { %201 = shalt.err (!%p198_p4)
}
 0x220   :  { %s202_s22 = scalar_lea.hbm %s264_s2, 16 }
 0x221   :  { %p203_p5 = scmp.ne.s32.totalorder %s264_s2, %s202_s22  ;;  %p206_p6 = scmp.lt.u32.totalorder %s202_s22, %s264_s2 }
 0x223   :  { %p208_p7 = pnand %p206_p6, %p203_p5 }
 0x225   :  { %211 = shalt.err (!%p208_p7)
}
 0x226   :  { %158 = dma.vmem_to_hbm [thread:$0]  %s156_s1, 16, %s264_s2, [#allocation4]  }
 0x227   :  { %212 = dma.done.wait [#allocation4], 16  }
 0x228   :  { %213 = vsyncadd [#allocation4], 4294967280 }
 0x229   :  { %162 = vsyncpa [#allocation4], 1 }

</bundles_post_ra>
